<compile_context>
chip_gen: v7x
topology: tpu7x:2x2x1
jax: 0.10.0
libtpu: 0.0.40
codegen_flags: <defaults>
</compile_context>

<pallas_src>
import functools

import jax
import jax.numpy as jnp
from jax import lax
from jax.experimental import pallas as pl
from jax.experimental.pallas import tpu as pltpu


def _pvt_attn_kernel(x_ref, wqkv_ref, wp_ref, bp_ref, o_ref, qkv_scr, *,
                     num_heads, tq):
    """One batch element per grid program.

    x_ref   : (1, N, C)  bf16 input tokens
    wqkv_ref: (C, 3C)    bf16 fused [Wq*scale | Wkv] weight, (in, out) layout
    wp_ref  : (C, C)     bf16 proj weight, (in, out) layout
    bp_ref  : (1, C)     f32  proj bias
    o_ref   : (1, N, C)  f32  output tokens
    qkv_scr : (N, 3C)    bf16 VMEM scratch holding the fused projection
    """
    x = x_ref[0]                               # (N, C) bf16
    n, c = x.shape
    hd = c // num_heads
    n_tiles = n // tq

    # Fused q/kv projection over the full sequence (q weight pre-scaled by
    # `scale` host-side). f32 MXU accumulation, stored to scratch as bf16 so
    # the per-tile loop can slice it with dynamic (sublane-aligned) starts.
    qkv = jnp.dot(x, wqkv_ref[...], preferred_element_type=jnp.float32)
    qkv_scr[...] = qkv.astype(jnp.bfloat16)    # (N, 3C)

    wp = wp_ref[...]                           # (C, C) bf16
    bp = bp_ref[...]                           # (1, C) f32

    def tile_body(ti, carry):
        q0 = pl.multiple_of(ti * tq, tq)       # aligned query-row offset
        acc = jnp.zeros((tq, c), jnp.float32)
        for h in range(num_heads):             # static unroll over heads
            q = qkv_scr[pl.ds(q0, tq), h * hd:(h + 1) * hd]          # (tq, hd)
            k = qkv_scr[:, c + h * hd: c + (h + 1) * hd]             # (n, hd)
            v = qkv_scr[:, 2 * c + h * hd: 2 * c + (h + 1) * hd]     # (n, hd)

            # q @ k^T without materializing a transpose of k.
            s = lax.dot_general(q, k, (((1,), (1,)), ((), ())),
                                preferred_element_type=jnp.float32)  # (tq, n)
            s = s - jnp.max(s, axis=-1, keepdims=True)
            p = jnp.exp(s)                                           # EUP
            denom = jnp.sum(p, axis=-1, keepdims=True)               # (tq, 1)

            y = jnp.dot(p.astype(jnp.bfloat16), v,
                        preferred_element_type=jnp.float32)          # (tq, hd)
            # Normalize after the PV matmul: tq*hd multiplies instead of tq*n,
            # reciprocal on the EUP slot instead of a VPU divide.
            y = y * pl.reciprocal(denom, approx=True)

            # Fold per-head output-projection slice into the accumulator:
            # concat_h(y_h) @ Wp == sum_h y_h @ Wp[h*hd:(h+1)*hd, :]
            acc = acc + jnp.dot(y.astype(jnp.bfloat16),
                                wp[h * hd:(h + 1) * hd, :],
                                preferred_element_type=jnp.float32)

        o_ref[0, pl.ds(q0, tq), :] = (acc + bp).astype(o_ref.dtype)
        return carry

    lax.fori_loop(0, n_tiles, tile_body, 0)


def pvt_attention(x, wq_t, wkv_t, wp_t, bp, *, num_heads, scale, tq=64):
    """x: (B, N, C) float32. Weights pre-transposed to (in, out) layout."""
    B, N, C = x.shape
    tq = min(tq, N)
    assert N % tq == 0, "query tile must divide N"
    assert C % num_heads == 0

    # Host-side prep: fold the attention scale into Wq (free), fuse q/kv into
    # one (C, 3C) weight, and cast MXU inputs to bf16 (f32 accumulation).
    wqkv = jnp.concatenate([wq_t * scale, wkv_t], axis=1).astype(jnp.bfloat16)
    xb = x.astype(jnp.bfloat16)
    wpb = wp_t.astype(jnp.bfloat16)
    bpf = jnp.asarray(bp, jnp.float32).reshape(1, C)

    kernel = functools.partial(_pvt_attn_kernel, num_heads=num_heads, tq=tq)
    return pl.pallas_call(
        kernel,
        out_shape=jax.ShapeDtypeStruct((B, N, C), x.dtype),
        grid_spec=pltpu.PrefetchScalarGridSpec(
            num_scalar_prefetch=0,
            grid=(B,),
            in_specs=[
                pl.BlockSpec((1, N, C), lambda b: (b, 0, 0)),
                pl.BlockSpec((C, 3 * C), lambda b: (0, 0)),
                pl.BlockSpec((C, C), lambda b: (0, 0)),
                pl.BlockSpec((1, C), lambda b: (0, 0)),
            ],
            out_specs=pl.BlockSpec((1, N, C), lambda b: (b, 0, 0)),
            scratch_shapes=[pltpu.VMEM((N, 3 * C), jnp.bfloat16)],
        ),
        # Total VMEM footprint < 200 KiB at these shapes; no vmem_limit needed.
        # For real PVT stage-1 shapes (N ~ 3136) the query/key blocking above
        # must stay and vmem_limit_bytes would need raising on v7x (64 MiB).
        compiler_params=pltpu.CompilerParams(
            dimension_semantics=("parallel",)),
    )(xb, wqkv, wpb, bpf)


def pvt_attention_ref(x, wq_t, wkv_t, wp_t, bp, *, num_heads, scale):
    """Pure-JAX f32 reference mirroring the PyTorch forward."""
    B, N, C = x.shape
    hd = C // num_heads
    q = (x @ wq_t).reshape(B, N, num_heads, hd).transpose(0, 2, 1, 3)
    kv = (x @ wkv_t).reshape(B, N, 2, num_heads, hd).transpose(2, 0, 3, 1, 4)
    k, v = kv[0], kv[1]
    attn = (q @ k.transpose(0, 1, 3, 2)) * scale
    attn = jax.nn.softmax(attn, axis=-1)
    y = (attn @ v).transpose(0, 2, 1, 3).reshape(B, N, C)
    return y @ wp_t + bp


if __name__ == "__main__":
    # Small, module-consistent shapes: B=2, H=W=16 -> N=256 tokens, dim=32.
    B, Hs, Ws, dim = 2, 16, 16, 32
    num_heads = 1                 # matches module-level global `num_heads = 1`
    N = Hs * Ws
    head_dim = dim // num_heads
    scale = head_dim ** (-0.5)    # qk_scale=None -> head_dim**-0.5

    key = jax.random.PRNGKey(0)
    kx, kq, kkv, kp = jax.random.split(key, 4)

    x = jax.random.normal(kx, (B, N, dim), dtype=jnp.float32)
    # trunc_normal_(std=0.02) init approximated with normal(0, 0.02); weights
    # stored pre-transposed to (in, out).
    wq_t = 0.02 * jax.random.normal(kq, (dim, dim), dtype=jnp.float32)
    wkv_t = 0.02 * jax.random.normal(kkv, (dim, 2 * dim), dtype=jnp.float32)
    wp_t = 0.02 * jax.random.normal(kp, (dim, dim), dtype=jnp.float32)
    bp = jnp.zeros((dim,), dtype=jnp.float32)     # nn.init.constant_(bias, 0)

    out = pvt_attention(x, wq_t, wkv_t, wp_t, bp,
                        num_heads=num_heads, scale=scale)
    out = jax.block_until_ready(out)

    ref = pvt_attention_ref(x, wq_t, wkv_t, wp_t, bp,
                            num_heads=num_heads, scale=scale)
    assert out.shape == (B, N, dim)
    # bf16 MXU inputs + approx reciprocal -> compare relative to signal scale.
    max_err = float(jnp.max(jnp.abs(out - ref)))
    ref_mag = float(jnp.max(jnp.abs(ref)))
    assert max_err <= 0.05 * ref_mag + 1e-6, (
        f"mismatch vs reference: max_err={max_err}, ref_mag={ref_mag}")

    print("KERNEL_OK")
</pallas_src>

<mosaic_0001>
module attributes {stable_mosaic.version = 11 : i64} {
  func.func @_pvt_attn_kernel(%arg0: i32, %arg1: memref<1x256x32xbf16, #tpu.memory_space<vmem>>, %arg2: memref<32x96xbf16, #tpu.memory_space<vmem>>, %arg3: memref<32x32xbf16, #tpu.memory_space<vmem>>, %arg4: memref<1x32xf32, #tpu.memory_space<vmem>>, %arg5: memref<1x256x32xf32, #tpu.memory_space<vmem>>, %arg6: memref<256x96xbf16, #tpu.memory_space<vmem>>) attributes {dimension_semantics = [#tpu.dimension_semantics<parallel>], iteration_bounds = array<i64: 2>, scalar_prefetch = 0 : i64, scratch_operands = 1 : i64, tpu.core_type = #tpu.core_type<tc>, window_params = [{transform_indices = @transform_0, window_bounds = array<i64: 1, 256, 32>}, {pipeline_mode = #tpu.pipeline_mode<synchronous>, transform_indices = @transform_1, window_bounds = array<i64: 32, 96>}, {pipeline_mode = #tpu.pipeline_mode<synchronous>, transform_indices = @transform_2, window_bounds = array<i64: 32, 32>}, {pipeline_mode = #tpu.pipeline_mode<synchronous>, transform_indices = @transform_3, window_bounds = array<i64: 1, 32>}, {transform_indices = @transform_4, window_bounds = array<i64: 1, 256, 32>}]} {
    %c0 = arith.constant 0 : index
    %c0_0 = arith.constant 0 : index
    %c0_1 = arith.constant 0 : index
    %0 = vector.load %arg1[%c0, %c0_0, %c0_1] : memref<1x256x32xbf16, #tpu.memory_space<vmem>>, vector<1x256x32xbf16>
    %1 = vector.shape_cast %0 : vector<1x256x32xbf16> to vector<256x32xbf16>
    %c0_2 = arith.constant 0 : index
    %c0_3 = arith.constant 0 : index
    %2 = vector.load %arg2[%c0_2, %c0_3] : memref<32x96xbf16, #tpu.memory_space<vmem>>, vector<32x96xbf16>
    %cst = arith.constant dense<0.000000e+00> : vector<256x96xf32>
    %3 = tpu.matmul %1, %2, %cst {dimension_numbers = #tpu.dot_dimension_numbers<[1], [0], [0], [1], [0, 0, 1, 1], [], []>} : vector<256x32xbf16>, vector<32x96xbf16>, vector<256x96xf32> -> vector<256x96xf32>
    %4 = arith.truncf %3 : vector<256x96xf32> to vector<256x96xbf16>
    %c0_4 = arith.constant 0 : index
    %c0_5 = arith.constant 0 : index
    %5 = vector.load %arg6[%c0_4, %c0_5] : memref<256x96xbf16, #tpu.memory_space<vmem>>, vector<256x96xbf16>
    tpu.vector_store %arg6[%c0_4, %c0_5], %4 {strides = array<i32>} : memref<256x96xbf16, #tpu.memory_space<vmem>>, vector<256x96xbf16>,
    %c0_6 = arith.constant 0 : index
    %c0_7 = arith.constant 0 : index
    %6 = vector.load %arg3[%c0_6, %c0_7] : memref<32x32xbf16, #tpu.memory_space<vmem>>, vector<32x32xbf16>
    %c0_8 = arith.constant 0 : index
    %c0_9 = arith.constant 0 : index
    %7 = vector.load %arg4[%c0_8, %c0_9] : memref<1x32xf32, #tpu.memory_space<vmem>>, vector<1x32xf32>
    %c0_i32 = arith.constant 0 : i32
    %c4_i32 = arith.constant 4 : i32
    %8 = arith.addi %c0_i32, %c4_i32 : i32
    %c1_i32 = arith.constant 1 : i32
    scf.for %arg7 = %c0_i32 to %8 step %c1_i32  : i32 {
      %c64_i32 = arith.constant 64 : i32
      %9 = arith.muli %arg7, %c64_i32 : i32
      %10 = tpu.assume_multiple %9, 64 : i32
      %cst_11 = arith.constant 0.000000e+00 : f32
      %11 = vector.broadcast %cst_11 : f32 to vector<64x32xf32>
      %12 = arith.index_cast %10 : i32 to index
      %c0_12 = arith.constant 0 : index
      %13 = vector.load %arg6[%12, %c0_12] : memref<256x96xbf16, #tpu.memory_space<vmem>>, vector<64x32xbf16>
      %c0_13 = arith.constant 0 : index
      %c32 = arith.constant 32 : index
      %14 = vector.load %arg6[%c0_13, %c32] : memref<256x96xbf16, #tpu.memory_space<vmem>>, vector<256x32xbf16>
      %c0_14 = arith.constant 0 : index
      %c64 = arith.constant 64 : index
      %15 = vector.load %arg6[%c0_14, %c64] : memref<256x96xbf16, #tpu.memory_space<vmem>>, vector<256x32xbf16>
      %cst_15 = arith.constant dense<0.000000e+00> : vector<64x256xf32>
      %16 = tpu.matmul %13, %14, %cst_15 {dimension_numbers = #tpu.dot_dimension_numbers<[1], [1], [0], [0], [0, 0, 1, 0], [], []>} : vector<64x32xbf16>, vector<256x32xbf16>, vector<64x256xf32> -> vector<64x256xf32>
      %cst_16 = arith.constant dense<0xFF800000> : vector<64xf32>
      %17 = vector.multi_reduction <maximumf>, %16, %cst_16 [1] : vector<64x256xf32> to vector<64xf32>
      %18 = vector.shape_cast %17 : vector<64xf32> to vector<64x1xf32>
      %19 = vector.broadcast %18 : vector<64x1xf32> to vector<64x256xf32>
      %20 = arith.subf %16, %19 : vector<64x256xf32>
      %21 = math.exp %20 : vector<64x256xf32>
      %cst_17 = arith.constant dense<0.000000e+00> : vector<64xf32>
      %22 = vector.multi_reduction <add>, %21, %cst_17 [1] : vector<64x256xf32> to vector<64xf32>
      %23 = vector.shape_cast %22 : vector<64xf32> to vector<64x1xf32>
      %24 = arith.truncf %21 : vector<64x256xf32> to vector<64x256xbf16>
      %cst_18 = arith.constant dense<0.000000e+00> : vector<64x32xf32>
      %25 = tpu.matmul %24, %15, %cst_18 {dimension_numbers = #tpu.dot_dimension_numbers<[1], [0], [0], [1], [0, 0, 1, 1], [], []>} : vector<64x256xbf16>, vector<256x32xbf16>, vector<64x32xf32> -> vector<64x32xf32>
      %26 = tpu.reciprocal %23 {approx = true} : vector<64x1xf32> -> vector<64x1xf32>
      %27 = vector.broadcast %26 : vector<64x1xf32> to vector<64x32xf32>
      %28 = arith.mulf %25, %27 : vector<64x32xf32>
      %29 = arith.truncf %28 : vector<64x32xf32> to vector<64x32xbf16>
      %cst_19 = arith.constant dense<0.000000e+00> : vector<64x32xf32>
      %30 = tpu.matmul %29, %6, %cst_19 {dimension_numbers = #tpu.dot_dimension_numbers<[1], [0], [0], [1], [0, 0, 1, 1], [], []>} : vector<64x32xbf16>, vector<32x32xbf16>, vector<64x32xf32> -> vector<64x32xf32>
      %31 = arith.addf %11, %30 : vector<64x32xf32>
      %32 = vector.broadcast %7 : vector<1x32xf32> to vector<64x32xf32>
      %33 = arith.addf %31, %32 : vector<64x32xf32>
      %c0_20 = arith.constant 0 : index
      %34 = arith.index_cast %10 : i32 to index
      %c0_21 = arith.constant 0 : index
      %35 = vector.load %arg5[%c0_20, %34, %c0_21] : memref<1x256x32xf32, #tpu.memory_space<vmem>>, vector<1x64x32xf32>
      %36 = vector.shape_cast %35 : vector<1x64x32xf32> to vector<64x32xf32>
      %37 = vector.shape_cast %33 : vector<64x32xf32> to vector<1x64x32xf32>
      tpu.vector_store %arg5[%c0_20, %34, %c0_21], %37 {strides = array<i32>} : memref<1x256x32xf32, #tpu.memory_space<vmem>>, vector<1x64x32xf32>,
    }
    %c4_i32_10 = arith.constant 4 : i32
    return
  }
  func.func @transform_0(%arg0: i32) -> (i32, i32, i32) {
    %c0_i32 = arith.constant 0 : i32
    %c0_i32_0 = arith.constant 0 : i32
    %c0_i32_1 = arith.constant 0 : i32
    return %arg0, %c0_i32, %c0_i32_0 : i32, i32, i32
  }
  func.func @transform_1(%arg0: i32) -> (i32, i32) {
    %c0_i32 = arith.constant 0 : i32
    %c0_i32_0 = arith.constant 0 : i32
    %c0_i32_1 = arith.constant 0 : i32
    return %c0_i32, %c0_i32_0 : i32, i32
  }
  func.func @transform_2(%arg0: i32) -> (i32, i32) {
    %c0_i32 = arith.constant 0 : i32
    %c0_i32_0 = arith.constant 0 : i32
    %c0_i32_1 = arith.constant 0 : i32
    return %c0_i32, %c0_i32_0 : i32, i32
  }
  func.func @transform_3(%arg0: i32) -> (i32, i32) {
    %c0_i32 = arith.constant 0 : i32
    %c0_i32_0 = arith.constant 0 : i32
    %c0_i32_1 = arith.constant 0 : i32
    return %c0_i32, %c0_i32_0 : i32, i32
  }
  func.func @transform_4(%arg0: i32) -> (i32, i32, i32) {
    %c0_i32 = arith.constant 0 : i32
    %c0_i32_0 = arith.constant 0 : i32
    %c0_i32_1 = arith.constant 0 : i32
    return %arg0, %c0_i32, %c0_i32_0 : i32, i32, i32
  }
}

</mosaic_0001>

<bundles_post_ra>
// kernel: tpu_custom_call.1
= control target key start
LH: loop header
LB: loop body
LE: loop exit
PB: predicated region body
PF: predicated region fallthrough
CT: control target
= control target key end

     0   :  { %s1527_s15 = smov 0   ;;  %s1735_s0 = inlined_call_operand.vmem [shape: bf16[2,256,32], index: 0, kind: input, shape index: {}]   ;;  %s1736_s1 = inlined_call_operand.vmem [shape: bf16[32,96], index: 1, kind: input, shape index: {}]   ;;  %s1737_s2 = inlined_call_operand.vmem [shape: bf16[32,32], index: 2, kind: input, shape index: {}]   ;;  %s1738_s3 = inlined_call_operand.vmem [shape: f32[1,32], index: 3, kind: input, shape index: {}]   ;;  %s1739_s4 = inlined_call_operand.vmem [shape: f32[2,256,32], index: 4, kind: output, shape index: {}]  }
   0x1 LB: > { %s1192_s16 = sadd.s32 4294967295, %s1494_s15   ;;  %p1196_p0 = scmp.ge.s32.totalorder %s1494_s15, 1  ;;  %s1494_s15 = sphi %s1527_s15, %s14_s15  }
   0x2   : > { %p162_p1 = scmp.lt.s32.totalorder %s1494_s15, 3 }
   0x4   : > { %p163_p2 = pnand %p1196_p0, %p162_p1 }
   0x5   : > { %v1418_v0 = vld [vmem:[%s1736_s1] sm:$0xff] (!%p163_p2)   ;;  %p188_p3 = scmp.lt.s32.totalorder (!%p163_p2), %s1192_s16, 1  ;;  %v1419_v1 = vld [vmem:[%s1736_s1 + $0x8] sm:$0xff] (!%p163_p2)   ;;  %vm327_vm0 = vcmask (!%p163_p2), 261120   ;;  %vm553_vm1 = vcmask (!%p163_p2), 785408   ;;  %s1624_s13 = smov (!%p163_p2), 0  }
   0x6   : > { %166 = sbr.rel (%p163_p2) target bundleno = 1298 (0x512), region = 36  ;;  %1340 = vmatprep.subr.bf16.mxu0 (!%p163_p2), %v1418_v0  ;;  %1388 = vmatprep.subr.bf16.mxu1 (!%p163_p2), %v1418_v0  ;;  %v1586_v18 = vld [vmem:[%s1737_s2] sm:$0xf] (!%p163_p2)  ;;  %v1591_v19 = vld [vmem:[%s1737_s2 + $0x4] sm:$0xf] (!%p163_p2) }
   0x7   : > { %1341 = vmatpush3.bf16.msra.mxu0 (!%p163_p2), %v1418_v0  ;;  %1390 = vmatpush3.bf16.msra.mxu1 (!%p163_p2), %v1418_v0  ;;  %v1596_v20 = vld [vmem:[%s1737_s2 + $0x8] sm:$0xf] (!%p163_p2)  ;;  %v1601_v21 = vld [vmem:[%s1737_s2 + $0xc] sm:$0xf] (!%p163_p2)  ;;  %v1606_v22 = vld [vmem:[%s1738_s3] ss:$0 sm:$0xff] (!%p163_p2) }
   0x8   : > { %1342 = vmatprep.subr.bf16.mxu0 (!%p163_p2), %v1419_v1  ;;  %1389 = vmatprep.subr.bf16.mxu1 (!%p163_p2), %v1419_v1 }
   0xb   : > { %1343 = vmatpush3.bf16.msra.mxu0 (!%p163_p2), %v1419_v1  ;;  %1391 = vmatpush3.bf16.msra.mxu1 (!%p163_p2), %v1419_v1 }
   0xd   : > { %s1741_s16 = smov (!%p188_p3, %s1192_s16), 1 }
   0xe   : > { %s1250_s21 = sshll.u32 %s1741_s16, 7  ;;  %s1251_s22 = sshll.u32 %s1741_s16, 8 }
   0xf   : > { %s1544_s25 = scalar_lea.vmem %s1735_s0, %s1250_s21  ;;  %s1549_s28 = scalar_lea.vmem %s1739_s4, %s1251_s22 }
  0x10   : > { %v1420_v2 = vld [vmem:[%s1544_s25] sm:$0xff]   ;;  %v1422_v4 = vld [vmem:[%s1544_s25 + $0x8] sm:$0xff]   ;;  %v1424_v6 = vld [vmem:[%s1544_s25 + $0x10] sm:$0xff]  }
  0x11   : > { %v1421_v3 = vld [vmem:[%s1544_s25 + $0x40] sm:$0xff]   ;;  %1344 = vmatprep.mubr.msk.bf16.mxu0 %vm327_vm0, %v1420_v2  ;;  %v1423_v5 = vld [vmem:[%s1544_s25 + $0x48] sm:$0xff]   ;;  %v1425_v7 = vld [vmem:[%s1544_s25 + $0x50] sm:$0xff]  }
  0x12   : > { %1360 = vmatprep.mubr.msk.bf16.mxu1 %vm327_vm0, %v1421_v3  ;;  %1345 = vmatmul.mubr.msk.bf16.vlgmr.msra.gmra.mrb[0].mxu0 %vm327_vm0, %v1422_v4  ;;  %v1426_v8 = vld [vmem:[%s1544_s25 + $0x18] sm:$0xff]   ;;  %v1428_v10 = vld [vmem:[%s1544_s25 + $0x20] sm:$0xff]   ;;  %v1430_v12 = vld [vmem:[%s1544_s25 + $0x28] sm:$0xff]  }
  0x13   : > { %1361 = vmatmul.mubr.msk.bf16.vlgmr.msra.gmra.mrb[0].mxu1 %vm327_vm0, %v1423_v5  ;;  %1348 = vmatprep.mubr.msk.bf16.mxu0 %vm327_vm0, %v1424_v6  ;;  %v1427_v9 = vld [vmem:[%s1544_s25 + $0x58] sm:$0xff]   ;;  %v1429_v11 = vld [vmem:[%s1544_s25 + $0x60] sm:$0xff]   ;;  %v1431_v13 = vld [vmem:[%s1544_s25 + $0x68] sm:$0xff]  }
  0x14   : > { %1364 = vmatprep.mubr.msk.bf16.mxu1 %vm327_vm0, %v1425_v7  ;;  %v1432_v14 = vld [vmem:[%s1544_s25 + $0x30] sm:$0xff]   ;;  %v1434_v16 = vld [vmem:[%s1544_s25 + $0x38] sm:$0xff]  }
  0x15   : > { %v1433_v15 = vld [vmem:[%s1544_s25 + $0x70] sm:$0xff]   ;;  %v1435_v17 = vld [vmem:[%s1544_s25 + $0x78] sm:$0xff]  }
  0x1a   : > { %1349 = vmatmul.mubr.msk.bf16.gmra.mrb[4].mxu0 %vm327_vm0, %v1426_v8 }
  0x1b   : > { %1365 = vmatmul.mubr.msk.bf16.gmra.mrb[4].mxu1 %vm327_vm0, %v1427_v9  ;;  %1352 = vmatprep.mubr.msk.bf16.mxu0 %vm327_vm0, %v1428_v10 }
  0x1c   : > { %1368 = vmatprep.mubr.msk.bf16.mxu1 %vm327_vm0, %v1429_v11 }
  0x22   : > { %1353 = vmatmul.mubr.msk.bf16.gmra.mrb[8].mxu0 %vm327_vm0, %v1430_v12 }
  0x23   : > { %1369 = vmatmul.mubr.msk.bf16.gmra.mrb[8].mxu1 %vm327_vm0, %v1431_v13  ;;  %1356 = vmatprep.mubr.msk.bf16.mxu0 %vm327_vm0, %v1432_v14 }
  0x24   : > { %1372 = vmatprep.mubr.msk.bf16.mxu1 %vm327_vm0, %v1433_v15 }
  0x2a   : > { %1357 = vmatmul.mubr.msk.bf16.gmra.mrb[12].mxu0 %vm327_vm0, %v1434_v16 }
  0x2b   : > { %1373 = vmatmul.mubr.msk.bf16.gmra.mrb[12].mxu1 %vm327_vm0, %v1435_v17 }
  0xe5   : > { %v1346_v23 = vpop.f32.mrb[0].mxu0 }
  0xe6   : > { %v1362_v24 = vpop.f32.mrb[0].mxu1  ;;  %v410_v25 = vpop.f32.mrb[1].mxu0 }
  0xe7   : > { %v474_v26 = vpop.f32.mrb[1].mxu1  ;;  %v1347_v27 = vpop.f32.mrb[2].mxu0 }
  0xe8   : > { %v538_v28 = vpack.c.bf16 %v1347_v27, %v1346_v23  ;;  %v1363_v29 = vpop.f32.mrb[2].mxu1  ;;  %v413_v30 = vpop.f32.mrb[3].mxu0 }
  0xe9   : > { %v546_v31 = vpack.c.bf16 %v1363_v29, %v1362_v24  ;;  %v537_v32 = vpack.c.bf16 %v413_v30, %v410_v25  ;;  %v477_v33 = vpop.f32.mrb[3].mxu1 }
  0xea   : > { %555 = vst.msk [vmem:[#allocation2 + $0x8] sm:$0xff] %vm553_vm1, %v538_v28  ;;  %v545_v34 = vpack.c.bf16 %v477_v33, %v474_v26 }
  0xeb   : > { %563 = vst.msk [vmem:[#allocation2 + $0x48] sm:$0xff] %vm553_vm1, %v546_v31  ;;  %554 = vst.msk [vmem:[#allocation2] sm:$0xff] %vm553_vm1, %v537_v32 }
  0xec   : > { %562 = vst.msk [vmem:[#allocation2 + $0x40] sm:$0xff] %vm553_vm1, %v545_v34 }
  0xed   : > { %v1350_v35 = vpop.f32.mrb[4].mxu0 }
  0xee   : > { %v1366_v36 = vpop.f32.mrb[4].mxu1  ;;  %v426_v37 = vpop.f32.mrb[5].mxu0 }
  0xef   : > { %v490_v38 = vpop.f32.mrb[5].mxu1  ;;  %v1351_v39 = vpop.f32.mrb[6].mxu0 }
  0xf0   : > { %v540_v40 = vpack.c.bf16 %v1351_v39, %v1350_v35  ;;  %v1367_v41 = vpop.f32.mrb[6].mxu1  ;;  %v429_v42 = vpop.f32.mrb[7].mxu0 }
  0xf1   : > { %v548_v43 = vpack.c.bf16 %v1367_v41, %v1366_v36  ;;  %v539_v44 = vpack.c.bf16 %v429_v42, %v426_v37  ;;  %v493_v45 = vpop.f32.mrb[7].mxu1 }
  0xf2   : > { %557 = vst.msk [vmem:[#allocation2 + $0x18] sm:$0xff] %vm553_vm1, %v540_v40  ;;  %v547_v46 = vpack.c.bf16 %v493_v45, %v490_v38 }
  0xf3   : > { %565 = vst.msk [vmem:[#allocation2 + $0x58] sm:$0xff] %vm553_vm1, %v548_v43  ;;  %556 = vst.msk [vmem:[#allocation2 + $0x10] sm:$0xff] %vm553_vm1, %v539_v44 }
  0xf4   : > { %564 = vst.msk [vmem:[#allocation2 + $0x50] sm:$0xff] %vm553_vm1, %v547_v46 }
  0xf5   : > { %v1354_v47 = vpop.f32.mrb[8].mxu0 }
  0xf6   : > { %v1370_v48 = vpop.f32.mrb[8].mxu1  ;;  %v442_v49 = vpop.f32.mrb[9].mxu0 }
  0xf7   : > { %v506_v50 = vpop.f32.mrb[9].mxu1  ;;  %v1355_v51 = vpop.f32.mrb[10].mxu0 }
  0xf8   : > { %v542_v52 = vpack.c.bf16 %v1355_v51, %v1354_v47  ;;  %v1371_v53 = vpop.f32.mrb[10].mxu1  ;;  %v445_v54 = vpop.f32.mrb[11].mxu0 }
  0xf9   : > { %v550_v55 = vpack.c.bf16 %v1371_v53, %v1370_v48  ;;  %v541_v56 = vpack.c.bf16 %v445_v54, %v442_v49  ;;  %v509_v57 = vpop.f32.mrb[11].mxu1 }
  0xfa   : > { %559 = vst.msk [vmem:[#allocation2 + $0x28] sm:$0xff] %vm553_vm1, %v542_v52  ;;  %v549_v58 = vpack.c.bf16 %v509_v57, %v506_v50 }
  0xfb   : > { %567 = vst.msk [vmem:[#allocation2 + $0x68] sm:$0xff] %vm553_vm1, %v550_v55  ;;  %558 = vst.msk [vmem:[#allocation2 + $0x20] sm:$0xff] %vm553_vm1, %v541_v56 }
  0xfc   : > { %566 = vst.msk [vmem:[#allocation2 + $0x60] sm:$0xff] %vm553_vm1, %v549_v58 }
  0xfd   : > { %v1358_v59 = vpop.f32.mrb[12].mxu0 }
  0xfe   : > { %v1374_v60 = vpop.f32.mrb[12].mxu1  ;;  %v458_v61 = vpop.f32.mrb[13].mxu0 }
  0xff   : > { %v522_v62 = vpop.f32.mrb[13].mxu1  ;;  %v1359_v63 = vpop.f32.mrb[14].mxu0 }
 0x100   : > { %v544_v0 = vpack.c.bf16 %v1359_v63, %v1358_v59  ;;  %v1375_v1 = vpop.f32.mrb[14].mxu1  ;;  %v461_v2 = vpop.f32.mrb[15].mxu0 }
 0x101   : > { %v552_v3 = vpack.c.bf16 %v1375_v1, %v1374_v60  ;;  %v543_v4 = vpack.c.bf16 %v461_v2, %v458_v61  ;;  %v525_v5 = vpop.f32.mrb[15].mxu1 }
 0x102   : > { %561 = vst.msk [vmem:[#allocation2 + $0x38] sm:$0xff] %vm553_vm1, %v544_v0  ;;  %v551_v6 = vpack.c.bf16 %v525_v5, %v522_v62 }
 0x103   : > { %569 = vst.msk [vmem:[#allocation2 + $0x78] sm:$0xff] %vm553_vm1, %v552_v3  ;;  %560 = vst.msk [vmem:[#allocation2 + $0x30] sm:$0xff] %vm553_vm1, %v543_v4 }
 0x104   : > { %568 = vst.msk [vmem:[#allocation2 + $0x70] sm:$0xff] %vm553_vm1, %v551_v6 }
 0x105 LB: >> { %v590_v7 = vld [vmem:[#allocation2] sm:$0xff]  ;;  %v591_v8 = vld [vmem:[#allocation2 + $0x8] sm:$0xff]  ;;  %s1500_s14 = smov 96   ;;  %v600_v11 = vld [vmem:[#allocation2 + $0x50] sm:$0xff]  ;;  %s1235_s16 = sshll.u32 %s1498_s13, 6  ;;  %s1498_s13 = sphi %s1624_s13, %s580_s13  }
 0x106   : >> { %622 = vrot.lane.b32.xlu0 %v590_v7, %s1500_s14  ;;  %624 = vrot.lane.b32.xlu1 %v591_v8, %s1500_s14  ;;  %v598_v9 = vld [vmem:[#allocation2 + $0x40] sm:$0xff]  ;;  %v599_v10 = vld [vmem:[#allocation2 + $0x48] sm:$0xff]  ;;  %v592_v12 = vld [vmem:[#allocation2 + $0x10] sm:$0xff]  ;;  %s582_s17 = sshra.s32 %s1235_s16, 4  ;;  %s1501_s20 = smov 64  }
 0x107   : >> { %v601_v13 = vld [vmem:[#allocation2 + $0x58] sm:$0xff]  ;;  %v602_v15 = vld [vmem:[#allocation2 + $0x60] sm:$0xff]  ;;  %v603_v17 = vld [vmem:[#allocation2 + $0x68] sm:$0xff]  ;;  %s1236_s18 = sshll.u32 %s582_s17, 3  ;;  %s1119_s21 = scalar_lea.vmem %s1549_s28, %s1235_s16 }
 0x108   : >> { %v593_v14 = vld [vmem:[#allocation2 + $0x18] sm:$0xff]  ;;  %v594_v16 = vld [vmem:[#allocation2 + $0x20] sm:$0xff]  ;;  %v595_v23 = vld [vmem:[#allocation2 + $0x28] sm:$0xff]  ;;  %s1638_s19 = scalar_lea.vmem [#allocation2], %s1236_s18  ;;  %s580_s13 = sadd.s32 1, %s1498_s13  }
 0x109   : >> { %v1631_v27 = vld [vmem:[#allocation2 + $0x38] sm:$0xff]  ;;  %p577_p4 = scmp.ge.s32.totalorder %s580_s13, 4  }
 0x10a   : >> { %638 = vrot.lane.b32.xlu0 %v598_v9, %s1500_s14  ;;  %640 = vrot.lane.b32.xlu1 %v599_v10, %s1500_s14  ;;  %v596_v25 = vld [vmem:[#allocation2 + $0x30] sm:$0xff]  ;;  %v1629_v26 = vld [vmem:[#allocation2 + $0x78] sm:$0xff] }
 0x10b   : >> { %v604_v24 = vld [vmem:[#allocation2 + $0x70] sm:$0xff]  ;;  %v586_v28 = vld [vmem:[%s1638_s19] sm:$0xff]  ;;  %v587_v53 = vld [vmem:[%s1638_s19 + $0x8] sm:$0xff] }
 0x10c   : >> { %1286 = vmatprep.mubr.msk.bf16.mxu0 %vm327_vm0, %v586_v28  ;;  %v588_v54 = vld [vmem:[%s1638_s19 + $0x10] sm:$0xff]  ;;  %v589_v55 = vld [vmem:[%s1638_s19 + $0x18] sm:$0xff] }
 0x10e   : >> { %642 = vrot.lane.b32.xlu1 %v600_v11, %s1500_s14  ;;  %626 = vrot.lane.b32.xlu0 %v592_v12, %s1500_s14 }
 0x112   : >> { %644 = vrot.lane.b32.xlu1 %v601_v13, %s1500_s14  ;;  %628 = vrot.lane.b32.xlu0 %v593_v14, %s1500_s14 }
 0x116   : >> { %646 = vrot.lane.b32.xlu1 %v602_v15, %s1500_s14  ;;  %630 = vrot.lane.b32.xlu0 %v594_v16, %s1500_s14 }
 0x11a   : >> { %648 = vrot.lane.b32.xlu1 %v603_v17, %s1500_s14  ;;  %632 = vrot.lane.b32.xlu0 %v595_v23, %s1500_s14 }
 0x11e   : >> { %650 = vrot.lane.b32.xlu1 %v604_v24, %s1500_s14  ;;  %634 = vrot.lane.b32.xlu0 %v596_v25, %s1500_s14 }
 0x122   : >> { %652 = vrot.lane.b32.xlu1 %v1629_v26, %s1500_s14  ;;  %636 = vrot.lane.b32.xlu0 %v1631_v27, %s1500_s14 }
 0x126   : >> { %891 = vrot.lane.b32.xlu1 %v590_v7, %s1501_s20  ;;  %907 = vrot.lane.b32.xlu0 %v598_v9, %s1501_s20 }
 0x12a   : >> { %893 = vrot.lane.b32.xlu1 %v591_v8, %s1501_s20  ;;  %909 = vrot.lane.b32.xlu0 %v599_v10, %s1501_s20 }
 0x12e   : >> { %895 = vrot.lane.b32.xlu1 %v592_v12, %s1501_s20  ;;  %911 = vrot.lane.b32.xlu0 %v600_v11, %s1501_s20 }
 0x132   : >> { %897 = vrot.lane.b32.xlu1 %v593_v14, %s1501_s20  ;;  %913 = vrot.lane.b32.xlu0 %v601_v13, %s1501_s20 }
 0x136   : >> { %899 = vrot.lane.b32.xlu1 %v594_v16, %s1501_s20  ;;  %915 = vrot.lane.b32.xlu0 %v602_v15, %s1501_s20 }
 0x13a   : >> { %901 = vrot.lane.b32.xlu1 %v595_v23, %s1501_s20  ;;  %917 = vrot.lane.b32.xlu0 %v603_v17, %s1501_s20 }
 0x13e   : >> { %903 = vrot.lane.b32.xlu1 %v596_v25, %s1501_s20  ;;  %919 = vrot.lane.b32.xlu0 %v604_v24, %s1501_s20 }
 0x178   : >> { %v623_v29 = vpop.permute.xlu0 %622  ;;  %v625_v30 = vpop.permute.xlu1 %624 }
 0x179   : >> { %v667_v33 = vsel %vm327_vm0, %v623_v29, 0  ;;  %v670_v35 = vsel %vm327_vm0, %v625_v30, 0 }
 0x17c   : >> { %v639_v31 = vpop.permute.xlu0 %638  ;;  %v641_v32 = vpop.permute.xlu1 %640 }
 0x17d   : >> { %1392 = vmatprep.subr.msk.bf16.mxu0 %vm327_vm0, %v639_v31 }
 0x17e   : >> { %1271 = vmatpush3.bf16.xpose.msra.mxu0 %v667_v33 }
 0x17f   : >> { %1393 = vmatprep.subr.msk.bf16.mxu0 %vm327_vm0, %v641_v32 }
 0x180   : >> { %v643_v34 = vpop.permute.xlu1 %642  ;;  %v627_v36 = vpop.permute.xlu0 %626 }
 0x181   : >> { %v673_v37 = vsel %vm327_vm0, %v627_v36, 0 }
 0x184   : >> { %v645_v38 = vpop.permute.xlu1 %644  ;;  %v629_v39 = vpop.permute.xlu0 %628 }
 0x185   : >> { %v676_v40 = vsel %vm327_vm0, %v629_v39, 0 }
 0x186   : >> { %1273 = vmatpush3.bf16.xpose.msra.mxu0 %v670_v35 }
 0x187   : >> { %1394 = vmatprep.subr.msk.bf16.mxu0 %vm327_vm0, %v643_v34 }
 0x188   : >> { %v647_v41 = vpop.permute.xlu1 %646  ;;  %v631_v42 = vpop.permute.xlu0 %630 }
 0x189   : >> { %v679_v43 = vsel %vm327_vm0, %v631_v42, 0 }
 0x18c   : >> { %v649_v44 = vpop.permute.xlu1 %648  ;;  %v633_v45 = vpop.permute.xlu0 %632 }
 0x18d   : >> { %v682_v46 = vsel %vm327_vm0, %v633_v45, 0 }
 0x18e   : >> { %1275 = vmatpush3.bf16.xpose.msra.mxu0 %v673_v37 }
 0x18f   : >> { %1395 = vmatprep.subr.msk.bf16.mxu0 %vm327_vm0, %v645_v38 }
 0x190   : >> { %v651_v47 = vpop.permute.xlu1 %650  ;;  %v635_v48 = vpop.permute.xlu0 %634 }
 0x191   : >> { %v685_v49 = vsel %vm327_vm0, %v635_v48, 0 }
 0x194   : >> { %v653_v50 = vpop.permute.xlu1 %652  ;;  %v637_v51 = vpop.permute.xlu0 %636 }
 0x195   : >> { %v688_v52 = vsel %vm327_vm0, %v637_v51, 0 }
 0x196   : >> { %1277 = vmatpush3.bf16.xpose.msra.mxu0 %v676_v40 }
 0x197   : >> { %1396 = vmatprep.subr.msk.bf16.mxu0 %vm327_vm0, %v647_v41 }
 0x198   : >> { %v908_v56 = vpop.permute.xlu0 %907  ;;  %v892_v57 = vpop.permute.xlu1 %891 }
 0x199   : >> { %1294 = vmatprep.subr.bf16.mxu1 %v908_v56 }
 0x19a   : >> { %1295 = vmatpush3.bf16.msra.mxu1 %v892_v57 }
 0x19c   : >> { %v910_v58 = vpop.permute.xlu0 %909  ;;  %v894_v59 = vpop.permute.xlu1 %893 }
 0x19d   : >> { %1296 = vmatprep.subr.bf16.mxu1 %v910_v58 }
 0x19e   : >> { %1279 = vmatpush3.bf16.xpose.msra.mxu0 %v679_v43  ;;  %1297 = vmatpush3.bf16.msra.mxu1 %v894_v59 }
 0x19f   : >> { %1397 = vmatprep.subr.msk.bf16.mxu0 %vm327_vm0, %v649_v44 }
 0x1a0   : >> { %v912_v60 = vpop.permute.xlu0 %911  ;;  %v896_v61 = vpop.permute.xlu1 %895 }
 0x1a1   : >> { %1298 = vmatprep.subr.bf16.mxu1 %v912_v60 }
 0x1a2   : >> { %1299 = vmatpush3.bf16.msra.mxu1 %v896_v61 }
 0x1a4   : >> { %v914_v62 = vpop.permute.xlu0 %913  ;;  %v898_v63 = vpop.permute.xlu1 %897 }
 0x1a5   : >> { %1300 = vmatprep.subr.bf16.mxu1 %v914_v62 }
 0x1a6   : >> { %1281 = vmatpush3.bf16.xpose.msra.mxu0 %v682_v46  ;;  %1301 = vmatpush3.bf16.msra.mxu1 %v898_v63 }
 0x1a7   : >> { %1398 = vmatprep.subr.msk.bf16.mxu0 %vm327_vm0, %v651_v47 }
 0x1a8   : >> { %v916_v0 = vpop.permute.xlu0 %915  ;;  %v900_v1 = vpop.permute.xlu1 %899 }
 0x1a9   : >> { %1302 = vmatprep.subr.bf16.mxu1 %v916_v0 }
 0x1aa   : >> { %1303 = vmatpush3.bf16.msra.mxu1 %v900_v1 }
 0x1ac   : >> { %v918_v2 = vpop.permute.xlu0 %917  ;;  %v902_v3 = vpop.permute.xlu1 %901 }
 0x1ad   : >> { %1304 = vmatprep.subr.bf16.mxu1 %v918_v2 }
 0x1ae   : >> { %1283 = vmatpush3.bf16.xpose.msra.mxu0 %v685_v49  ;;  %1305 = vmatpush3.bf16.msra.mxu1 %v902_v3 }
 0x1af   : >> { %1399 = vmatprep.subr.msk.bf16.mxu0 %vm327_vm0, %v653_v50 }
 0x1b0   : >> { %v920_v4 = vpop.permute.xlu0 %919  ;;  %v904_v5 = vpop.permute.xlu1 %903 }
 0x1b1   : >> { %1306 = vmatprep.subr.bf16.mxu1 %v920_v4 }
 0x1b2   : >> { %1307 = vmatpush3.bf16.msra.mxu1 %v904_v5 }
 0x1b6   : >> { %1285 = vmatpush3.bf16.xpose.msra.mxu0 %v688_v52 }
 0x1bd   : >> { %1287 = vmatmul.mubr.msk.bf16.vlgmr.msra.gmra.mrb[0].mxu0 %vm327_vm0, %v586_v28 }
 0x1be   : >> { %1288 = vmatprep.mubr.msk.bf16.mxu0 %vm327_vm0, %v587_v53 }
 0x1c5   : >> { %1289 = vmatmul.mubr.msk.bf16.gmra.mrb[4].mxu0 %vm327_vm0, %v587_v53 }
 0x1c6   : >> { %1290 = vmatprep.mubr.msk.bf16.mxu0 %vm327_vm0, %v588_v54 }
 0x1cd   : >> { %1291 = vmatmul.mubr.msk.bf16.gmra.mrb[8].mxu0 %vm327_vm0, %v588_v54 }
 0x1ce   : >> { %1292 = vmatprep.mubr.msk.bf16.mxu0 %vm327_vm0, %v589_v55 }
 0x1d5   : >> { %1293 = vmatmul.mubr.msk.bf16.gmra.mrb[12].mxu0 %vm327_vm0, %v589_v55 }
 0x290   : >> { %v748_v6 = vpop.f32.mrb[0].mxu0 }
 0x291   : >> { %v750_v7 = vpop.f32.mrb[1].mxu0 }
 0x292   : >> { %v752_v8 = vpop.f32.mrb[2].mxu0  ;;  %v787_v9 = vmax.f32 %v748_v6, %v750_v7 }
 0x293   : >> { %v754_v10 = vpop.f32.mrb[3].mxu0 }
 0x294   : >> { %788 = vmax.xlane.f32.xlu0 %v787_v9  ;;  %v790_v11 = vmax.f32 %v752_v8, %v754_v10 }
 0x296   : >> { %791 = vmax.xlane.f32.xlu1 %v790_v11 }
 0x298   : >> { %v758_v12 = vpop.f32.mrb[4].mxu0 }
 0x299   : >> { %v760_v13 = vpop.f32.mrb[5].mxu0 }
 0x29a   : >> { %v762_v14 = vpop.f32.mrb[6].mxu0  ;;  %v793_v15 = vmax.f32 %v758_v12, %v760_v13 }
 0x29b   : >> { %v764_v16 = vpop.f32.mrb[7].mxu0 }
 0x29c   : >> { %794 = vmax.xlane.f32.xlu0 %v793_v15  ;;  %v796_v17 = vmax.f32 %v762_v14, %v764_v16 }
 0x29e   : >> { %797 = vmax.xlane.f32.xlu1 %v796_v17 }
 0x2a0   : >> { %v768_v23 = vpop.f32.mrb[8].mxu0 }
 0x2a1   : >> { %v770_v24 = vpop.f32.mrb[9].mxu0 }
 0x2a2   : >> { %v772_v25 = vpop.f32.mrb[10].mxu0  ;;  %v799_v28 = vmax.f32 %v768_v23, %v770_v24 }
 0x2a3   : >> { %v774_v29 = vpop.f32.mrb[11].mxu0 }
 0x2a4   : >> { %800 = vmax.xlane.f32.xlu0 %v799_v28  ;;  %v802_v30 = vmax.f32 %v772_v25, %v774_v29 }
 0x2a6   : >> { %803 = vmax.xlane.f32.xlu1 %v802_v30 }
 0x2a8   : >> { %v1682_v31 = vpop.f32.mrb[12].mxu0 }
 0x2a9   : >> { %v1684_v32 = vpop.f32.mrb[13].mxu0 }
 0x2aa   : >> { %v1686_v33 = vpop.f32.mrb[14].mxu0  ;;  %v805_v34 = vmax.f32 %v1682_v31, %v1684_v32 }
 0x2ab   : >> { %v1690_v35 = vpop.f32.mrb[15].mxu0 }
 0x2ac   : >> { %v808_v36 = vmax.f32 %v1686_v33, %v1690_v35  ;;  %806 = vmax.xlane.f32.xlu0 %v805_v34 }
 0x2ae   : >> { %809 = vmax.xlane.f32.xlu1 %v808_v36 }
 0x2bf   : >> { %905 = vrot.lane.b32.xlu1 %v1631_v27, %s1501_s20 }
 0x2c2   : >> { %921 = vrot.lane.b32.xlu0 %v1629_v26, %s1501_s20 }
 0x321   : >> { %v789_v37 = vpop.xlane.xlu0 %788 }
 0x322   : >> { %v811_v38 = vsub.f32 %v748_v6, %v789_v37  ;;  %v812_v39 = vsub.f32 %v750_v7, %v789_v37 }
 0x323   : >> { %v792_v40 = vpop.xlane.xlu1 %791 }
 0x324   : >> { %v827_v41 = vmul.f32 1.442695, %v811_v38  ;;  %v829_v42 = vmul.f32 1.442695, %v812_v39  ;;  %v813_v43 = vsub.f32 %v752_v8, %v792_v40  ;;  %v814_v44 = vsub.f32 %v754_v10, %v792_v40 }
 0x326   : >> { %1436 = vpow2.f32 %v827_v41  ;;  %v831_v45 = vmul.f32 1.442695, %v813_v43  ;;  %v833_v46 = vmul.f32 1.442695, %v814_v44 }
 0x327   : >> { %1438 = vpow2.f32 %v829_v42 }
 0x328   : >> { %1440 = vpow2.f32 %v831_v45 }
 0x329   : >> { %1442 = vpow2.f32 %v833_v46  ;;  %v795_v47 = vpop.xlane.xlu0 %794 }
 0x32a   : >> { %v815_v48 = vsub.f32 %v758_v12, %v795_v47  ;;  %v816_v27 = vsub.f32 %v760_v13, %v795_v47 }
 0x32b   : >> { %v798_v49 = vpop.xlane.xlu1 %797 }
 0x32c   : >> { %v835_v50 = vmul.f32 1.442695, %v815_v48  ;;  %v837_v26 = vmul.f32 1.442695, %v816_v27  ;;  %v817_v51 = vsub.f32 %v762_v14, %v798_v49  ;;  %v818_v52 = vsub.f32 %v764_v16, %v798_v49 }
 0x32e   : >> { %1444 = vpow2.f32 %v835_v50  ;;  %v839_v53 = vmul.f32 1.442695, %v817_v51  ;;  %v841_v54 = vmul.f32 1.442695, %v818_v52  ;;  %v1243_v51 = vcombine.low %v1596_v20, %v1601_v21 }
 0x32f   : >> { %1446 = vpow2.f32 %v837_v26  ;;  %v1242_v26 = vcombine.low %v1586_v18, %v1591_v19 }
 0x330   : >> { %v1437_v55 = vpop.eup %1436  ;;  %1448 = vpow2.f32 %v839_v53 }
 0x331   : >> { %v1439_v56 = vpop.eup %1438  ;;  %1450 = vpow2.f32 %v841_v54  ;;  %v801_v57 = vpop.xlane.xlu0 %800 }
 0x332   : >> { %v1441_v58 = vpop.eup %1440  ;;  %v819_v59 = vsub.f32 %v768_v23, %v801_v57  ;;  %v820_v60 = vsub.f32 %v770_v24, %v801_v57  ;;  %v859_v61 = vadd.f32 %v1439_v56, %v1437_v55 }
 0x333   : >> { %v1443_v62 = vpop.eup %1442  ;;  %v804_v63 = vpop.xlane.xlu1 %803  ;;  %v883_v0 = vpack.c.bf16 %v1441_v58, %v1437_v55 }
 0x334   : >> { %v843_v1 = vmul.f32 1.442695, %v819_v59  ;;  %v845_v2 = vmul.f32 1.442695, %v820_v60  ;;  %v821_v3 = vsub.f32 %v772_v25, %v804_v63  ;;  %v822_v4 = vsub.f32 %v774_v29, %v804_v63  ;;  %860 = vadd.xlane.f32.xlu0 %v859_v61 }
 0x335   : >> { %v884_v5 = vpack.c.bf16 %v1443_v62, %v1439_v56  ;;  %v862_v6 = vadd.f32 %v1443_v62, %v1441_v58 }
 0x336   : >> { %1452 = vpow2.f32 %v843_v1  ;;  %v847_v7 = vmul.f32 1.442695, %v821_v3  ;;  %v849_v8 = vmul.f32 1.442695, %v822_v4 }
 0x337   : >> { %1454 = vpow2.f32 %v845_v2  ;;  %971 = vmatprep.mubr.bf16.mxu1 %v884_v5  ;;  %863 = vadd.xlane.f32.xlu1 %v862_v6 }
 0x338   : >> { %v1445_v9 = vpop.eup %1444  ;;  %1456 = vpow2.f32 %v847_v7 }
 0x339   : >> { %v1447_v10 = vpop.eup %1446  ;;  %1458 = vpow2.f32 %v849_v8  ;;  %v807_v11 = vpop.xlane.xlu0 %806 }
 0x33a   : >> { %v1449_v12 = vpop.eup %1448  ;;  %v823_v13 = vsub.f32 %v1682_v31, %v807_v11  ;;  %v824_v14 = vsub.f32 %v1684_v32, %v807_v11  ;;  %v865_v15 = vadd.f32 %v1447_v10, %v1445_v9 }
 0x33b   : >> { %v1451_v16 = vpop.eup %1450  ;;  %v810_v17 = vpop.xlane.xlu1 %809  ;;  %v885_v23 = vpack.c.bf16 %v1449_v12, %v1445_v9 }
 0x33c   : >> { %v851_v24 = vmul.f32 1.442695, %v823_v13  ;;  %v853_v25 = vmul.f32 1.442695, %v824_v14  ;;  %866 = vadd.xlane.f32.xlu0 %v865_v15  ;;  %v825_v28 = vsub.f32 %v1686_v33, %v810_v17  ;;  %v826_v29 = vsub.f32 %v1690_v35, %v810_v17 }
 0x33d   : >> { %v922_v30 = vpop.permute.xlu0 %921  ;;  %v868_v34 = vadd.f32 %v1451_v16, %v1449_v12  ;;  %v886_v36 = vpack.c.bf16 %v1451_v16, %v1447_v10 }
 0x33e   : >> { %1460 = vpow2.f32 %v851_v24  ;;  %v855_v37 = vmul.f32 1.442695, %v825_v28  ;;  %v857_v38 = vmul.f32 1.442695, %v826_v29  ;;  %1308 = vmatprep.subr.bf16.mxu1 %v922_v30 }
 0x33f   : >> { %1462 = vpow2.f32 %v853_v25  ;;  %v906_v31 = vpop.permute.xlu1 %905 }
 0x340   : >> { %v1453_v32 = vpop.eup %1452  ;;  %1464 = vpow2.f32 %v855_v37  ;;  %869 = vadd.xlane.f32.xlu0 %v868_v34  ;;  %1309 = vmatpush3.bf16.msra.mxu1 %v906_v31 }
 0x341   : >> { %v1455_v39 = vpop.eup %1454  ;;  %1466 = vpow2.f32 %v857_v38  ;;  %1376 = vmatprep.subr.bf16.mxu1 %v1242_v26 }
 0x342   : >> { %v1457_v40 = vpop.eup %1456  ;;  %v871_v41 = vadd.f32 %v1455_v39, %v1453_v32 }
 0x343   : >> { %v1459_v33 = vpop.eup %1458  ;;  %972 = vmatmul.mubr.bf16.vlgmr.msra.gmra.mrb[0].mxu1 %v883_v0  ;;  %v887_v35 = vpack.c.bf16 %v1457_v40, %v1453_v32 }
 0x344   : >> { %872 = vadd.xlane.f32.xlu1 %v871_v41  ;;  %979 = vmatprep.mubr.bf16.mxu1 %v886_v36  ;;  %v874_v42 = vadd.f32 %v1459_v33, %v1457_v40  ;;  %v888_v43 = vpack.c.bf16 %v1459_v33, %v1455_v39 }
 0x345   : >> { %1377 = vmatpush3.bf16.msra.mxu1 %v1242_v26 }
 0x346   : >> { %875 = vadd.xlane.f32.xlu0 %v874_v42  ;;  %1378 = vmatprep.subr.bf16.mxu1 %v1243_v51 }
 0x348   : >> { %v1461_v44 = vpop.eup %1460 }
 0x349   : >> { %v1463_v45 = vpop.eup %1462  ;;  %1379 = vmatpush3.bf16.msra.mxu1 %v1243_v51 }
 0x34a   : >> { %v1465_v46 = vpop.eup %1464  ;;  %v877_v47 = vadd.f32 %v1463_v45, %v1461_v44 }
 0x34b   : >> { %v1467_v48 = vpop.eup %1466  ;;  %980 = vmatmul.mubr.bf16.gmra.mrb[4].mxu1 %v885_v23  ;;  %v889_v27 = vpack.c.bf16 %v1465_v46, %v1461_v44 }
 0x34c   : >> { %878 = vadd.xlane.f32.xlu1 %v877_v47  ;;  %987 = vmatprep.mubr.bf16.mxu1 %v888_v43  ;;  %v880_v49 = vadd.f32 %v1467_v48, %v1465_v46  ;;  %v890_v50 = vpack.c.bf16 %v1467_v48, %v1463_v45 }
 0x34e   : >> { %881 = vadd.xlane.f32.xlu0 %v880_v49 }
 0x353   : >> { %988 = vmatmul.mubr.bf16.gmra.mrb[8].mxu1 %v887_v35 }
 0x354   : >> { %995 = vmatprep.mubr.bf16.mxu1 %v890_v50 }
 0x35b   : >> { %996 = vmatmul.mubr.bf16.gmra.mrb[12].mxu1 %v889_v27 }
 0x3c1   : >> { %v861_v52 = vpop.xlane.xlu0 %860 }
 0x3c2   : >> { %1468 = vrcp.f32 %v861_v52 }
 0x3c4   : >> { %v864_v53 = vpop.xlane.xlu1 %863 }
 0x3c5   : >> { %1470 = vrcp.f32 %v864_v53 }
 0x3c9   : >> { %v867_v54 = vpop.xlane.xlu0 %866 }
 0x3ca   : >> { %1472 = vrcp.f32 %v867_v54 }
 0x3cc   : >> { %v1469_v61 = vpop.eup %1468 }
 0x3cd   : >> { %v870_v55 = vpop.xlane.xlu0 %869 }
 0x3ce   : >> { %1474 = vrcp.f32 %v870_v55 }
 0x3cf   : >> { %v1471_v63 = vpop.eup %1470 }
 0x3d1   : >> { %v873_v2 = vpop.xlane.xlu1 %872 }
 0x3d2   : >> { %1476 = vrcp.f32 %v873_v2 }
 0x3d3   : >> { %v876_v3 = vpop.xlane.xlu0 %875 }
 0x3d4   : >> { %1478 = vrcp.f32 %v876_v3  ;;  %v1473_v10 = vpop.eup %1472 }
 0x3d8   : >> { %v1475_v12 = vpop.eup %1474 }
 0x3d9   : >> { %v879_v15 = vpop.xlane.xlu1 %878 }
 0x3da   : >> { %1480 = vrcp.f32 %v879_v15 }
 0x3db   : >> { %v882_v16 = vpop.xlane.xlu0 %881 }
 0x3dc   : >> { %1482 = vrcp.f32 %v882_v16  ;;  %v1477_v30 = vpop.eup %1476 }
 0x3de   : >> { %v1479_v36 = vpop.eup %1478 }
 0x3e4   : >> { %v1481_v35 = vpop.eup %1480 }
 0x3e6   : >> { %v1483_v43 = vpop.eup %1482 }
 0x416   : >> { %v1310_v56 = vpop.f32.mrb[0].mxu1 }
 0x417   : >> { %v1311_v57 = vpop.f32.mrb[1].mxu1 }
 0x418   : >> { %v1312_v58 = vadd.f32 %v1311_v57, %v1310_v56  ;;  %v1313_v59 = vpop.f32.mrb[2].mxu1 }
 0x419   : >> { %v1314_v60 = vpop.f32.mrb[3].mxu1 }
 0x41a   : >> { %v1315_v62 = vadd.f32 %v1314_v60, %v1313_v59  ;;  %v1012_v0 = vmul.f32 %v1469_v61, %v1312_v58 }
 0x41c   : >> { %v1013_v1 = vmul.f32 %v1471_v63, %v1315_v62 }
 0x41e   : >> { %v1316_v4 = vpop.f32.mrb[4].mxu1  ;;  %v1020_v5 = vpack.c.bf16 %v1013_v1, %v1012_v0 }
 0x41f   : >> { %v1317_v6 = vpop.f32.mrb[5].mxu1 }
 0x420   : >> { %v1318_v7 = vadd.f32 %v1317_v6, %v1316_v4  ;;  %v1319_v8 = vpop.f32.mrb[6].mxu1  ;;  %1380 = vmatprep.mubr.msk.bf16.mxu1 %vm327_vm0, %v1020_v5 }
 0x421   : >> { %v1320_v9 = vpop.f32.mrb[7].mxu1 }
 0x422   : >> { %v1321_v11 = vadd.f32 %v1320_v9, %v1319_v8  ;;  %v1014_v13 = vmul.f32 %v1473_v10, %v1318_v7 }
 0x424   : >> { %v1015_v14 = vmul.f32 %v1475_v12, %v1321_v11 }
 0x426   : >> { %v1021_v17 = vpack.c.bf16 %v1015_v14, %v1014_v13  ;;  %v1322_v23 = vpop.f32.mrb[8].mxu1 }
 0x427   : >> { %v1323_v24 = vpop.f32.mrb[9].mxu1 }
 0x428   : >> { %v1324_v25 = vadd.f32 %v1323_v24, %v1322_v23  ;;  %v1325_v28 = vpop.f32.mrb[10].mxu1  ;;  %1381 = vmatmul.mubr.msk.bf16.vlgmr.msra.gmra.mrb[16].mxu1 %vm327_vm0, %v1021_v17 }
 0x429   : >> { %v1326_v29 = vpop.f32.mrb[11].mxu1 }
 0x42a   : >> { %v1327_v34 = vadd.f32 %v1326_v29, %v1325_v28  ;;  %v1016_v37 = vmul.f32 %v1477_v30, %v1324_v25 }
 0x42c   : >> { %v1017_v38 = vmul.f32 %v1479_v36, %v1327_v34 }
 0x42e   : >> { %v1328_v31 = vpop.f32.mrb[12].mxu1  ;;  %v1022_v32 = vpack.c.bf16 %v1017_v38, %v1016_v37 }
 0x42f   : >> { %v1329_v39 = vpop.f32.mrb[13].mxu1 }
 0x430   : >> { %v1330_v40 = vadd.f32 %v1329_v39, %v1328_v31  ;;  %v1331_v41 = vpop.f32.mrb[14].mxu1  ;;  %1384 = vmatprep.mubr.msk.bf16.mxu1 %vm327_vm0, %v1022_v32 }
 0x431   : >> { %v1332_v33 = vpop.f32.mrb[15].mxu1 }
 0x432   : >> { %v1333_v42 = vadd.f32 %v1332_v33, %v1331_v41  ;;  %v1018_v44 = vmul.f32 %v1481_v35, %v1330_v40 }
 0x434   : >> { %v1019_v45 = vmul.f32 %v1483_v43, %v1333_v42 }
 0x436   : >> { %v1023_v46 = vpack.c.bf16 %v1019_v45, %v1018_v44 }
 0x438   : >> { %1385 = vmatmul.mubr.msk.bf16.gmra.mrb[20].mxu1 %vm327_vm0, %v1023_v46 }
 0x4fb   : >> { %v1382_v47 = vpop.f32.mrb[16].mxu1 }
 0x4fc   : >> { %v1097_v48 = vadd.f32 %v1382_v47, %v1606_v22  ;;  %v1088_v27 = vpop.f32.mrb[17].mxu1 }
 0x4fd   : >> { %v1089_v49 = vadd.f32 %v1606_v22, %v1088_v27  ;;  %v1383_v50 = vpop.f32.mrb[18].mxu1 }
 0x4fe   : >> { %1122 = vst.msk [vmem:[%s1119_s21 + $0x10] sm:$0xff] %vm327_vm0, %v1097_v48  ;;  %v1100_v26 = vadd.f32 %v1383_v50, %v1606_v22  ;;  %v1091_v51 = vpop.f32.mrb[19].mxu1 }
 0x4ff   : >> { %1120 = vst.msk [vmem:[%s1119_s21] sm:$0xff] %vm327_vm0, %v1089_v49  ;;  %v1092_v52 = vadd.f32 %v1606_v22, %v1091_v51 }
 0x500   : >> { %1123 = vst.msk [vmem:[%s1119_s21 + $0x18] sm:$0xff] %vm327_vm0, %v1100_v26 }
 0x501   : >> { %1121 = vst.msk [vmem:[%s1119_s21 + $0x8] sm:$0xff] %vm327_vm0, %v1092_v52 }
 0x50b   : >> { %v1386_v53 = vpop.f32.mrb[20].mxu1  ;;  %579 = sbr.rel (!%p577_p4) target bundleno = 261 (0x105), region = 75 }
 0x50c   : >> { %v1113_v54 = vadd.f32 %v1386_v53, %v1606_v22  ;;  %v1104_v55 = vpop.f32.mrb[21].mxu1 }
 0x50d   : >> { %v1105_v56 = vadd.f32 %v1606_v22, %v1104_v55  ;;  %v1387_v57 = vpop.f32.mrb[22].mxu1 }
 0x50e   : >> { %1126 = vst.msk [vmem:[%s1119_s21 + $0x30] sm:$0xff] %vm327_vm0, %v1113_v54  ;;  %v1116_v58 = vadd.f32 %v1387_v57, %v1606_v22  ;;  %v1107_v59 = vpop.f32.mrb[23].mxu1 }
 0x50f   : >> { %1124 = vst.msk [vmem:[%s1119_s21 + $0x20] sm:$0xff] %vm327_vm0, %v1105_v56  ;;  %v1108_v60 = vadd.f32 %v1606_v22, %v1107_v59 }
 0x510   : >> { %1127 = vst.msk [vmem:[%s1119_s21 + $0x38] sm:$0xff] %vm327_vm0, %v1116_v58 }
 0x511   : >> { %1125 = vst.msk [vmem:[%s1119_s21 + $0x28] sm:$0xff] %vm327_vm0, %v1108_v60 }
 0x512 PF: > { %s14_s15 = sadd.s32 1, %s1494_s15  }
 0x513   : > { %p11_p5 = scmp.ge.s32.totalorder %s14_s15, 4  }
 0x515   :  { %13 = sbr.rel (!%p11_p5) target bundleno = 1 (0x1), region = 86 }

</bundles_post_ra>
